<compile_context>
chip_gen: v7x
topology: tpu7x:2x2x1
jax: 0.10.0
libtpu: 0.0.40
codegen_flags: <defaults>
</compile_context>

<pallas_src>
import functools
import math

import jax
import jax.numpy as jnp
from jax.experimental import pallas as pl
from jax.experimental.pallas import tpu as pltpu


def _round_up(x, m):
    return (x + m - 1) // m * m


# ----------------------------------------------------------------------------
# Kernel: one batch tile of the fused Actor forward.
# ----------------------------------------------------------------------------
def _actor_kernel(x_ref, w1_ref, w23_ref, b123_ref, wh_ref, bh_ref,
                  mu_ref, sg_ref, *, max_action, action_dim):
    x = x_ref[...]

    h = jnp.dot(x, w1_ref[...], preferred_element_type=jnp.float32) + b123_ref[0:1, :]
    h = jnp.maximum(h, 0.0)

    h = jnp.dot(h, w23_ref[0], preferred_element_type=jnp.float32) + b123_ref[1:2, :]
    h = jnp.maximum(h, 0.0)

    h = jnp.dot(h, w23_ref[1], preferred_element_type=jnp.float32) + b123_ref[2:3, :]
    h = jnp.maximum(h, 0.0)

    # Fused (mu | sigma) head: one matmul, then split into the two outputs.
    z = jnp.dot(h, wh_ref[...], preferred_element_type=jnp.float32) + bh_ref[...]
    a = max_action * jnp.tanh(z)

    mu_ref[...] = a[:, :action_dim].astype(mu_ref.dtype)
    sg_ref[...] = a[:, action_dim:2 * action_dim].astype(sg_ref.dtype)


# ----------------------------------------------------------------------------
# One-time parameter packing (hoisted out of the hot path).
# ----------------------------------------------------------------------------
def prepare_params(params):
    """Pack per-layer params once; returns arrays fed straight to actor_forward."""
    w23 = jnp.stack([params["w2"], params["w3"]], axis=0)                        # (2, h, h)
    b123 = jnp.concatenate([params["b1"], params["b2"], params["b3"]], axis=0)   # (3, h)
    w_head = jnp.concatenate([params["wmu"], params["wsg"]], axis=1)             # (h, 2A)
    b_head = jnp.concatenate([params["bmu"], params["bsg"]], axis=1)             # (1, 2A)
    return dict(w1=params["w1"], w23=w23, b123=b123, w_head=w_head, b_head=b_head)


def _actor_jax(x, packed, max_action):
    """Plain-XLA path for tiny batches (kernel fixed cost would dominate)."""
    h = jax.nn.relu(x @ packed["w1"] + packed["b123"][0:1])
    h = jax.nn.relu(h @ packed["w23"][0] + packed["b123"][1:2])
    h = jax.nn.relu(h @ packed["w23"][1] + packed["b123"][2:3])
    a = max_action * jnp.tanh(h @ packed["w_head"] + packed["b_head"])
    action_dim = packed["w_head"].shape[1] // 2
    return a[:, :action_dim], a[:, action_dim:]


# ----------------------------------------------------------------------------
# Forward wrapper: batch-tiled 1-D grid, VMEM-resident weights.
# ----------------------------------------------------------------------------
def actor_forward(x, packed, max_action, *, block_b=2048, min_pallas_rows=256):
    B, obs_dim = x.shape
    hidden = packed["w1"].shape[1]
    head_dim = packed["w_head"].shape[1]
    action_dim = head_dim // 2

    if B < min_pallas_rows:
        return _actor_jax(x, packed, max_action)

    # ---- batch tiling: multiple of 8 sublanes; >= 2 grid steps when possible
    # (lets the "parallel" axis shard across v7x's 2 TensorCores). -------------
    tb = min(block_b, _round_up(B, 8))
    if B > 8:
        tb = min(tb, _round_up(-(-B // 2), 8))
    Bp = _round_up(B, tb)
    if Bp != B:
        x = jnp.pad(x, ((0, Bp - B), (0, 0)))
    grid = (Bp // tb,)

    kernel = functools.partial(_actor_kernel, max_action=float(max_action),
                               action_dim=action_dim)

    mu, sg = pl.pallas_call(
        kernel,
        out_shape=(jax.ShapeDtypeStruct((Bp, action_dim), jnp.float32),
                   jax.ShapeDtypeStruct((Bp, action_dim), jnp.float32)),
        grid_spec=pltpu.PrefetchScalarGridSpec(
            num_scalar_prefetch=0,
            grid=grid,
            in_specs=[
                pl.BlockSpec((tb, obs_dim), lambda i: (i, 0)),           # x tile
                pl.BlockSpec((obs_dim, hidden), lambda i: (0, 0)),       # w1
                pl.BlockSpec((2, hidden, hidden), lambda i: (0, 0, 0)),  # w2|w3
                pl.BlockSpec((3, hidden), lambda i: (0, 0)),             # b1|b2|b3
                pl.BlockSpec((hidden, head_dim), lambda i: (0, 0)),      # wmu|wsg
                pl.BlockSpec((1, head_dim), lambda i: (0, 0)),           # bmu|bsg
            ],
            out_specs=[pl.BlockSpec((tb, action_dim), lambda i: (i, 0)),  # mu tile
                       pl.BlockSpec((tb, action_dim), lambda i: (i, 0))], # sigma tile
        ),
        compiler_params=pltpu.CompilerParams(
            dimension_semantics=("parallel",)),
    )(x, packed["w1"], packed["w23"], packed["b123"],
      packed["w_head"], packed["b_head"])

    if Bp != B:
        mu, sg = mu[:B], sg[:B]
    return mu, sg


# ----------------------------------------------------------------------------
# Init + pure-JAX reference (unpacked params) for verification.
# ----------------------------------------------------------------------------
def init_params(key, obs_dim, action_dim, hidden=64):
    """PyTorch nn.Linear default init: U(-1/sqrt(fan_in), 1/sqrt(fan_in)).
    Weights stored as (in_features, out_features) so the kernel does x @ W."""
    def linear(k, fan_in, fan_out):
        kw, kb = jax.random.split(k)
        bound = 1.0 / math.sqrt(fan_in)
        w = jax.random.uniform(kw, (fan_in, fan_out), jnp.float32, -bound, bound)
        b = jax.random.uniform(kb, (1, fan_out), jnp.float32, -bound, bound)
        return w, b

    keys = jax.random.split(key, 5)
    w1, b1 = linear(keys[0], obs_dim, hidden)
    w2, b2 = linear(keys[1], hidden, hidden)
    w3, b3 = linear(keys[2], hidden, hidden)
    wmu, bmu = linear(keys[3], hidden, action_dim)
    wsg, bsg = linear(keys[4], hidden, action_dim)
    return dict(w1=w1, b1=b1, w2=w2, b2=b2, w3=w3, b3=b3,
                wmu=wmu, bmu=bmu, wsg=wsg, bsg=bsg)


def actor_ref(x, params, max_action):
    h = jax.nn.relu(x @ params["w1"] + params["b1"])
    h = jax.nn.relu(h @ params["w2"] + params["b2"])
    h = jax.nn.relu(h @ params["w3"] + params["b3"])
    mu = max_action * jnp.tanh(h @ params["wmu"] + params["bmu"])
    sg = max_action * jnp.tanh(h @ params["wsg"] + params["bsg"])
    return mu, sg


if __name__ == "__main__":
    key = jax.random.PRNGKey(0)
    k_params, k_x, k_x2 = jax.random.split(key, 3)

    batch = 8
    obs_dim = 16      # args.obs_shape[agent_id]
    action_dim = 4    # args.action_shape[agent_id]
    max_action = 2.0  # args.high_action

    params = init_params(k_params, obs_dim, action_dim)
    packed = jax.block_until_ready(prepare_params(params))  # packed once, not per step

    # Small-shape check: force the Pallas path so the kernel itself runs.
    x = jax.random.normal(k_x, (batch, obs_dim), dtype=jnp.float32)
    mu, sigma = actor_forward(x, packed, max_action, min_pallas_rows=0)
    mu, sigma = jax.block_until_ready((mu, sigma))
    mu_ref, sigma_ref = actor_ref(x, params, max_action)
    assert jnp.allclose(mu, mu_ref, atol=1e-5, rtol=1e-5)
    assert jnp.allclose(sigma, sigma_ref, atol=1e-5, rtol=1e-5)

    # Larger batch: exercises multi-step grid, batch padding, and the
    # "parallel" batch axis (>= 2 steps so v7x can use both TensorCores).
    big = 3000
    x2 = jax.random.normal(k_x2, (big, obs_dim), dtype=jnp.float32)
    mu2, sigma2 = actor_forward(x2, packed, max_action)
    mu2, sigma2 = jax.block_until_ready((mu2, sigma2))
    mu2_ref, sigma2_ref = actor_ref(x2, params, max_action)
    assert jnp.allclose(mu2, mu2_ref, atol=1e-5, rtol=1e-5)
    assert jnp.allclose(sigma2, sigma2_ref, atol=1e-5, rtol=1e-5)

    print("KERNEL_OK")
</pallas_src>

<mosaic_0001>
module attributes {stable_mosaic.version = 11 : i64} {
  func.func @_actor_kernel(%arg0: i32, %arg1: memref<8x16xf32, #tpu.memory_space<vmem>>, %arg2: memref<16x64xf32, #tpu.memory_space<vmem>>, %arg3: memref<2x64x64xf32, #tpu.memory_space<vmem>>, %arg4: memref<3x64xf32, #tpu.memory_space<vmem>>, %arg5: memref<64x8xf32, #tpu.memory_space<vmem>>, %arg6: memref<1x8xf32, #tpu.memory_space<vmem>>, %arg7: memref<8x4xf32, #tpu.memory_space<vmem>>, %arg8: memref<8x4xf32, #tpu.memory_space<vmem>>) attributes {dimension_semantics = [#tpu.dimension_semantics<parallel>], iteration_bounds = array<i64: 1>, scalar_prefetch = 0 : i64, scratch_operands = 0 : i64, tpu.core_type = #tpu.core_type<tc>, window_params = [{transform_indices = @transform_0, window_bounds = array<i64: 8, 16>}, {pipeline_mode = #tpu.pipeline_mode<synchronous>, transform_indices = @transform_1, window_bounds = array<i64: 16, 64>}, {pipeline_mode = #tpu.pipeline_mode<synchronous>, transform_indices = @transform_2, window_bounds = array<i64: 2, 64, 64>}, {pipeline_mode = #tpu.pipeline_mode<synchronous>, transform_indices = @transform_3, window_bounds = array<i64: 3, 64>}, {pipeline_mode = #tpu.pipeline_mode<synchronous>, transform_indices = @transform_4, window_bounds = array<i64: 64, 8>}, {pipeline_mode = #tpu.pipeline_mode<synchronous>, transform_indices = @transform_5, window_bounds = array<i64: 1, 8>}, {transform_indices = @transform_6, window_bounds = array<i64: 8, 4>}, {transform_indices = @transform_7, window_bounds = array<i64: 8, 4>}]} {
    %c0 = arith.constant 0 : index
    %c0_0 = arith.constant 0 : index
    %0 = vector.load %arg1[%c0, %c0_0] : memref<8x16xf32, #tpu.memory_space<vmem>>, vector<8x16xf32>
    %c0_1 = arith.constant 0 : index
    %c0_2 = arith.constant 0 : index
    %1 = vector.load %arg2[%c0_1, %c0_2] : memref<16x64xf32, #tpu.memory_space<vmem>>, vector<16x64xf32>
    %cst = arith.constant dense<0.000000e+00> : vector<8x64xf32>
    %2 = tpu.matmul %0, %1, %cst {dimension_numbers = #tpu.dot_dimension_numbers<[1], [0], [0], [1], [0, 0, 1, 1], [], []>} : vector<8x16xf32>, vector<16x64xf32>, vector<8x64xf32> -> vector<8x64xf32>
    %c0_3 = arith.constant 0 : index
    %c0_4 = arith.constant 0 : index
    %3 = vector.load %arg4[%c0_3, %c0_4] : memref<3x64xf32, #tpu.memory_space<vmem>>, vector<1x64xf32>
    %4 = vector.broadcast %3 : vector<1x64xf32> to vector<8x64xf32>
    %5 = arith.addf %2, %4 : vector<8x64xf32>
    %cst_5 = arith.constant 0.000000e+00 : f32
    %6 = vector.broadcast %cst_5 : f32 to vector<8x64xf32>
    %7 = arith.maximumf %5, %6 : vector<8x64xf32>
    %c0_6 = arith.constant 0 : index
    %c0_7 = arith.constant 0 : index
    %c0_8 = arith.constant 0 : index
    %8 = vector.load %arg3[%c0_6, %c0_7, %c0_8] : memref<2x64x64xf32, #tpu.memory_space<vmem>>, vector<1x64x64xf32>
    %9 = vector.shape_cast %8 : vector<1x64x64xf32> to vector<64x64xf32>
    %cst_9 = arith.constant dense<0.000000e+00> : vector<8x64xf32>
    %10 = tpu.matmul %7, %9, %cst_9 {dimension_numbers = #tpu.dot_dimension_numbers<[1], [0], [0], [1], [0, 0, 1, 1], [], []>} : vector<8x64xf32>, vector<64x64xf32>, vector<8x64xf32> -> vector<8x64xf32>
    %c1 = arith.constant 1 : index
    %c0_10 = arith.constant 0 : index
    %11 = vector.load %arg4[%c1, %c0_10] : memref<3x64xf32, #tpu.memory_space<vmem>>, vector<1x64xf32>
    %12 = vector.broadcast %11 : vector<1x64xf32> to vector<8x64xf32>
    %13 = arith.addf %10, %12 : vector<8x64xf32>
    %cst_11 = arith.constant 0.000000e+00 : f32
    %14 = vector.broadcast %cst_11 : f32 to vector<8x64xf32>
    %15 = arith.maximumf %13, %14 : vector<8x64xf32>
    %c1_12 = arith.constant 1 : index
    %c0_13 = arith.constant 0 : index
    %c0_14 = arith.constant 0 : index
    %16 = vector.load %arg3[%c1_12, %c0_13, %c0_14] : memref<2x64x64xf32, #tpu.memory_space<vmem>>, vector<1x64x64xf32>
    %17 = vector.shape_cast %16 : vector<1x64x64xf32> to vector<64x64xf32>
    %cst_15 = arith.constant dense<0.000000e+00> : vector<8x64xf32>
    %18 = tpu.matmul %15, %17, %cst_15 {dimension_numbers = #tpu.dot_dimension_numbers<[1], [0], [0], [1], [0, 0, 1, 1], [], []>} : vector<8x64xf32>, vector<64x64xf32>, vector<8x64xf32> -> vector<8x64xf32>
    %c2 = arith.constant 2 : index
    %c0_16 = arith.constant 0 : index
    %19 = vector.load %arg4[%c2, %c0_16] : memref<3x64xf32, #tpu.memory_space<vmem>>, vector<1x64xf32>
    %20 = vector.broadcast %19 : vector<1x64xf32> to vector<8x64xf32>
    %21 = arith.addf %18, %20 : vector<8x64xf32>
    %cst_17 = arith.constant 0.000000e+00 : f32
    %22 = vector.broadcast %cst_17 : f32 to vector<8x64xf32>
    %23 = arith.maximumf %21, %22 : vector<8x64xf32>
    %c0_18 = arith.constant 0 : index
    %c0_19 = arith.constant 0 : index
    %24 = vector.load %arg5[%c0_18, %c0_19] : memref<64x8xf32, #tpu.memory_space<vmem>>, vector<64x8xf32>
    %cst_20 = arith.constant dense<0.000000e+00> : vector<8x8xf32>
    %25 = tpu.matmul %23, %24, %cst_20 {dimension_numbers = #tpu.dot_dimension_numbers<[1], [0], [0], [1], [0, 0, 1, 1], [], []>} : vector<8x64xf32>, vector<64x8xf32>, vector<8x8xf32> -> vector<8x8xf32>
    %c0_21 = arith.constant 0 : index
    %c0_22 = arith.constant 0 : index
    %26 = vector.load %arg6[%c0_21, %c0_22] : memref<1x8xf32, #tpu.memory_space<vmem>>, vector<1x8xf32>
    %27 = vector.broadcast %26 : vector<1x8xf32> to vector<8x8xf32>
    %28 = arith.addf %25, %27 : vector<8x8xf32>
    %29 = math.tanh %28 : vector<8x8xf32>
    %cst_23 = arith.constant 2.000000e+00 : f32
    %30 = vector.broadcast %cst_23 : f32 to vector<8x8xf32>
    %31 = arith.mulf %30, %29 : vector<8x8xf32>
    %32 = vector.extract_strided_slice %31 {offsets = [0, 0], sizes = [8, 4], strides = [1, 1]} : vector<8x8xf32> to vector<8x4xf32>
    %c0_24 = arith.constant 0 : index
    %c0_25 = arith.constant 0 : index
    %33 = vector.load %arg7[%c0_24, %c0_25] : memref<8x4xf32, #tpu.memory_space<vmem>>, vector<8x4xf32>
    tpu.vector_store %arg7[%c0_24, %c0_25], %32 {strides = array<i32>} : memref<8x4xf32, #tpu.memory_space<vmem>>, vector<8x4xf32>,
    %34 = vector.extract_strided_slice %31 {offsets = [0, 4], sizes = [8, 4], strides = [1, 1]} : vector<8x8xf32> to vector<8x4xf32>
    %c0_26 = arith.constant 0 : index
    %c0_27 = arith.constant 0 : index
    %35 = vector.load %arg8[%c0_26, %c0_27] : memref<8x4xf32, #tpu.memory_space<vmem>>, vector<8x4xf32>
    tpu.vector_store %arg8[%c0_26, %c0_27], %34 {strides = array<i32>} : memref<8x4xf32, #tpu.memory_space<vmem>>, vector<8x4xf32>,
    return
  }
  func.func @transform_0(%arg0: i32) -> (i32, i32) {
    %c0_i32 = arith.constant 0 : i32
    %c0_i32_0 = arith.constant 0 : i32
    return %arg0, %c0_i32 : i32, i32
  }
  func.func @transform_1(%arg0: i32) -> (i32, i32) {
    %c0_i32 = arith.constant 0 : i32
    %c0_i32_0 = arith.constant 0 : i32
    %c0_i32_1 = arith.constant 0 : i32
    return %c0_i32, %c0_i32_0 : i32, i32
  }
  func.func @transform_2(%arg0: i32) -> (i32, i32, i32) {
    %c0_i32 = arith.constant 0 : i32
    %c0_i32_0 = arith.constant 0 : i32
    %c0_i32_1 = arith.constant 0 : i32
    %c0_i32_2 = arith.constant 0 : i32
    return %c0_i32, %c0_i32_0, %c0_i32_1 : i32, i32, i32
  }
  func.func @transform_3(%arg0: i32) -> (i32, i32) {
    %c0_i32 = arith.constant 0 : i32
    %c0_i32_0 = arith.constant 0 : i32
    %c0_i32_1 = arith.constant 0 : i32
    return %c0_i32, %c0_i32_0 : i32, i32
  }
  func.func @transform_4(%arg0: i32) -> (i32, i32) {
    %c0_i32 = arith.constant 0 : i32
    %c0_i32_0 = arith.constant 0 : i32
    %c0_i32_1 = arith.constant 0 : i32
    return %c0_i32, %c0_i32_0 : i32, i32
  }
  func.func @transform_5(%arg0: i32) -> (i32, i32) {
    %c0_i32 = arith.constant 0 : i32
    %c0_i32_0 = arith.constant 0 : i32
    %c0_i32_1 = arith.constant 0 : i32
    return %c0_i32, %c0_i32_0 : i32, i32
  }
  func.func @transform_6(%arg0: i32) -> (i32, i32) {
    %c0_i32 = arith.constant 0 : i32
    %c0_i32_0 = arith.constant 0 : i32
    return %arg0, %c0_i32 : i32, i32
  }
  func.func @transform_7(%arg0: i32) -> (i32, i32) {
    %c0_i32 = arith.constant 0 : i32
    %c0_i32_0 = arith.constant 0 : i32
    return %arg0, %c0_i32 : i32, i32
  }
}

</mosaic_0001>

<bundles_post_ra>
// kernel: tpu_custom_call.1
= control target key start
LH: loop header
LB: loop body
LE: loop exit
PB: predicated region body
PF: predicated region fallthrough
CT: control target
= control target key end

     0   :  { %13 = vsyncpa [#allocation3], 0  ;;  %s578_s24 = smov [#allocation2]   ;;  %s708_s0 = inlined_call_operand.vmem [shape: f32[8,16], index: 0, kind: input, shape index: {}]   ;;  %s709_s1 = inlined_call_operand.vmem [shape: f32[16,64], index: 1, kind: input, shape index: {}]   ;;  %s710_s2 = inlined_call_operand.hbm [shape: f32[2,64,64], index: 2, kind: input, shape index: {}]   ;;  %s711_s3 = inlined_call_operand.vmem [shape: f32[3,64], index: 3, kind: input, shape index: {}]   ;;  %s712_s4 = inlined_call_operand.vmem [shape: f32[64,8], index: 4, kind: input, shape index: {}]   ;;  %s713_s5 = inlined_call_operand.vmem [shape: f32[1,8], index: 5, kind: input, shape index: {}]   ;;  %s714_s6 = inlined_call_operand.vmem [shape: f32[8,4], index: 6, kind: output, shape index: {0}]   ;;  %s715_s7 = inlined_call_operand.vmem [shape: f32[8,4], index: 7, kind: output, shape index: {1}]  }
   0x1   :  { %s23_s25 = sshll.u32 %s578_s24, 4  ;;  %s554_s28 = scalar_lea.hbm %s710_s2, 2048  ;;  %s24_s25 = int_to_ptr.vmem [resolvable:$true] %s23_s25 }
   0x2   :  { %p555_p0 = scmp.ne.s32.totalorder %s710_s2, %s554_s28  ;;  %p558_p1 = scmp.lt.u32.totalorder %s554_s28, %s710_s2 }
   0x4   :  { %p560_p2 = pnand %p558_p1, %p555_p0 }
   0x6   :  { %563 = shalt.err (!%p560_p2)
}
   0x7   :  { %s564_s10 = scalar_lea.vmem %s24_s25, 2048  ;;  %p569_p4 = scmp.lt.s32.totalorder %s24_s25, %s24_s25 }
   0x8   :  { %p565_p3 = scmp.ne.s32.totalorder %s24_s25, %s564_s10  ;;  %p570_p5 = scmp.lt.s32.totalorder %s564_s10, %s564_s10 }
   0xa   :  { %p571_p6 = por %p570_p5, %p569_p4 }
   0xc   :  { %p572_p7 = pnand %p571_p6, %p565_p3 }
   0xe   :  { %575 = shalt.err (!%p572_p7)
}
   0xf   :  { %s579_s11 = smov 128   ;;  %s580_s12 = smov 8  }
  0x10   :  { %29 = dma.hbm_to_vmem [thread:$0]  %s710_s2, 2048, %s24_s25, [#allocation3], %s579_s11, %s579_s11, %s580_s12  }
  0x11   :  { %576 = dma.done.wait [#allocation3], 2048  }
  0x12   :  { %577 = vsyncadd [#allocation3], 4294965248  ;;  %v581_v0 = vmov 0.0|0.0   ;;  %vm582_vm0 = vmmov 0   ;;  %v583_v1 = vmov 0.0   ;;  %v40_v2 = vld [vmem:[%s709_s1] sm:$0xff] }
  0x13   :  { %506 = vmatprep.subr.bf16.mxu0 %v581_v0  ;;  %446 = vmatprep.mubr.msk.f32.mxu0 %vm582_vm0, %v583_v1  ;;  %v41_v3 = vld [vmem:[%s709_s1 + $0x8] sm:$0xff]  ;;  %v122_v5 = vld [vmem:[#allocation2] sm:$0xff]  ;;  %v124_v7 = vld [vmem:[#allocation2 + $0x10] sm:$0xff]  ;;  %vm47_vm1 = vcmask 130048   ;;  %vm135_vm2 = vcmask 523264   ;;  %vm388_vm3 = vcmask 31744  }
  0x14   :  { %509 = vmatprep.subr.bf16.mxu1 %v581_v0  ;;  %465 = vmatprep.mubr.msk.f32.mxu1 %vm582_vm0, %v583_v1  ;;  %v507_v4 = vpack.c.bf16 %v41_v3, %v40_v2  ;;  %v123_v6 = vld [vmem:[#allocation2 + $0x8] sm:$0xff]  ;;  %v125_v9 = vld [vmem:[#allocation2 + $0x18] sm:$0xff]  ;;  %v39_v10 = vld [vmem:[%s708_s0] sm:$0xff] }
  0x15   :  { %v510_v8 = vpack.c.bf16 %v123_v6, %v122_v5  ;;  %v513_v11 = vpack.c.bf16 %v125_v9, %v124_v7  ;;  %v126_v12 = vld [vmem:[#allocation2 + $0x20] sm:$0xff]  ;;  %v127_v13 = vld [vmem:[#allocation2 + $0x28] sm:$0xff]  ;;  %v128_v15 = vld [vmem:[#allocation2 + $0x30] sm:$0xff] }
  0x16   :  { %508 = vmatpush3.bf16.msra.mxu0 %v507_v4  ;;  %v516_v14 = vpack.c.bf16 %v127_v13, %v126_v12  ;;  %v129_v16 = vld [vmem:[#allocation2 + $0x38] sm:$0xff]  ;;  %v211_v18 = vld [vmem:[#allocation2 + $0x40] sm:$0xff]  ;;  %v212_v19 = vld [vmem:[#allocation2 + $0x48] sm:$0xff] }
  0x17   :  { %511 = vmatpush3.bf16.msra.mxu1 %v510_v8  ;;  %521 = vmatprep.subr.bf16.mxu0 %v581_v0  ;;  %v519_v17 = vpack.c.bf16 %v129_v16, %v128_v15  ;;  %v213_v20 = vld [vmem:[#allocation2 + $0x50] sm:$0xff]  ;;  %v522_v21 = vpack.c.bf16 %v212_v19, %v211_v18  ;;  %v214_v22 = vld [vmem:[#allocation2 + $0x58] sm:$0xff]  ;;  %v215_v24 = vld [vmem:[#allocation2 + $0x60] sm:$0xff] }
  0x18   :  { %512 = vmatprep.subr.bf16.mxu1 %v581_v0  ;;  %v525_v23 = vpack.c.bf16 %v214_v22, %v213_v20  ;;  %v216_v25 = vld [vmem:[#allocation2 + $0x68] sm:$0xff]  ;;  %v404_v27 = vld [vmem:[%s711_s3] ss:$0 sm:$0xff]  ;;  %v217_v32 = vld [vmem:[#allocation2 + $0x70] sm:$0xff] }
  0x19   :  { %447 = vmatmul.mubr.msk.f32.vlgmr.msra.gmra.mrb[0].mxu0 %vm47_vm1, %v39_v10  ;;  %v528_v26 = vpack.c.bf16 %v216_v25, %v215_v24  ;;  %v218_v33 = vld [vmem:[#allocation2 + $0x78] sm:$0xff]  ;;  %v298_v35 = vld [vmem:[%s712_s4] sm:$0xff]  ;;  %v299_v36 = vld [vmem:[%s712_s4 + $0x8] sm:$0xff] }
  0x1a   :  { %484 = vmatprep.mubr.msk.f32.mxu0 %vm582_vm0, %v583_v1  ;;  %523 = vmatpush3.bf16.msra.mxu0 %v522_v21  ;;  %v531_v34 = vpack.c.bf16 %v218_v33, %v217_v32  ;;  %v300_v37 = vld [vmem:[%s712_s4 + $0x10] sm:$0xff]  ;;  %v534_v38 = vpack.c.bf16 %v299_v36, %v298_v35  ;;  %v301_v39 = vld [vmem:[%s712_s4 + $0x18] sm:$0xff]  ;;  %v302_v41 = vld [vmem:[%s712_s4 + $0x20] sm:$0xff] }
  0x1b   :  { %514 = vmatpush3.bf16.msra.mxu1 %v513_v11  ;;  %524 = vmatprep.subr.bf16.mxu0 %v581_v0  ;;  %v537_v40 = vpack.c.bf16 %v301_v39, %v300_v37  ;;  %v303_v42 = vld [vmem:[%s712_s4 + $0x28] sm:$0xff]  ;;  %v406_v44 = vld [vmem:[%s711_s3 + $0x1] ss:$0 sm:$0xff]  ;;  %v304_v49 = vld [vmem:[%s712_s4 + $0x30] sm:$0xff] }
  0x1c   :  { %515 = vmatprep.subr.bf16.mxu1 %v581_v0  ;;  %v540_v43 = vpack.c.bf16 %v303_v42, %v302_v41  ;;  %v305_v50 = vld [vmem:[%s712_s4 + $0x38] sm:$0xff]  ;;  %v408_v52 = vld [vmem:[%s711_s3 + $0x2] ss:$0 sm:$0xff]  ;;  %v410_v57 = vld [vmem:[%s713_s5] ss:$0 sm:$0xff]  ;;  %s584_s4 = smov 124  }
  0x1d   :  { %v543_v51 = vpack.c.bf16 %v305_v50, %v304_v49 }
  0x1e   :  { %526 = vmatpush3.bf16.msra.mxu0 %v525_v23 }
  0x1f   :  { %517 = vmatpush3.bf16.msra.mxu1 %v516_v14  ;;  %527 = vmatprep.subr.bf16.mxu0 %v581_v0 }
  0x20   :  { %518 = vmatprep.subr.bf16.mxu1 %v581_v0 }
  0x22   :  { %529 = vmatpush3.bf16.msra.mxu0 %v528_v26 }
  0x23   :  { %520 = vmatpush3.bf16.msra.mxu1 %v519_v17  ;;  %530 = vmatprep.subr.bf16.mxu0 %v581_v0 }
  0x24   :  { %533 = vmatprep.subr.bf16.mxu1 %v581_v0 }
  0x26   :  { %532 = vmatpush3.bf16.msra.mxu0 %v531_v34 }
  0xec   :  { %v117_v28 = vpop.f32.mrb[0].mxu0 }
  0xed   :  { %v118_v29 = vadd.f32 %v404_v27, %v117_v28  ;;  %v448_v30 = vpop.f32.mrb[1].mxu0 }
  0xef   :  { %v121_v31 = vmax.f32 %v118_v29, 0.0 }
  0xf1   :  { %466 = vmatmul.mubr.msk.f32.vlgmr.msra.gmra.mrb[0].mxu1 %vm135_vm2, %v121_v31 }
  0xf2   :  { %503 = vmatprep.mubr.msk.f32.mxu1 %vm582_vm0, %v583_v1  ;;  %535 = vmatpush3.bf16.msra.mxu1 %v534_v38 }
  0xf3   :  { %536 = vmatprep.subr.bf16.mxu1 %v581_v0 }
  0xf6   :  { %538 = vmatpush3.bf16.msra.mxu1 %v537_v40 }
  0xf7   :  { %539 = vmatprep.subr.bf16.mxu1 %v581_v0 }
  0xfa   :  { %541 = vmatpush3.bf16.msra.mxu1 %v540_v43 }
  0xfb   :  { %542 = vmatprep.subr.bf16.mxu1 %v581_v0 }
  0xfe   :  { %544 = vmatpush3.bf16.msra.mxu1 %v543_v51 }
 0x1c4   :  { %v205_v45 = vpop.f32.mrb[0].mxu1 }
 0x1c5   :  { %v206_v46 = vadd.f32 %v406_v44, %v205_v45  ;;  %v467_v47 = vpop.f32.mrb[1].mxu1 }
 0x1c7   :  { %v209_v48 = vmax.f32 %v206_v46, 0.0 }
 0x1c9   :  { %485 = vmatmul.mubr.msk.f32.vlgmr.msra.gmra.mrb[2].mxu0 %vm135_vm2, %v209_v48 }
 0x29c   :  { %v293_v53 = vpop.f32.mrb[2].mxu0 }
 0x29d   :  { %v294_v54 = vadd.f32 %v408_v52, %v293_v53  ;;  %v486_v55 = vpop.f32.mrb[3].mxu0 }
 0x29f   :  { %v297_v56 = vmax.f32 %v294_v54, 0.0 }
 0x2a1   :  { %504 = vmatmul.mubr.msk.f32.vlgmr.msra.gmra.mrb[2].mxu1 %vm135_vm2, %v297_v56 }
 0x374   :  { %v382_v58 = vpop.f32.mrb[2].mxu1 }
 0x375   :  { %v383_v59 = vadd.f32 %v410_v57, %v382_v58  ;;  %v505_v60 = vpop.f32.mrb[3].mxu1 }
 0x377   :  { %552 = vtanh.f32 %v383_v59 }
 0x381   :  { %v553_v61 = vpop.eup %552 }
 0x382   :  { %v387_v62 = vmul.f32 2.0, %v553_v61 }
 0x384   :  { %391 = vrot.lane.b32.xlu0 %v387_v62, %s584_s4  ;;  %389 = vst.msk [vmem:[%s714_s6] sm:$0xff] %vm388_vm3, %v387_v62 }
 0x3f6   :  { %v392_v63 = vpop.permute.xlu0 %391 }
 0x3f7   :  { %394 = vst.msk [vmem:[%s715_s7] sm:$0xff] %vm388_vm3, %v392_v63 }
 0x3f8   :  { %403 = vsyncpa [#allocation3], 1 }

</bundles_post_ra>
